<compile_context>
chip_gen: v5e
topology: v5e:2x2
jax: 0.10.0
libtpu: 0.0.40
codegen_flags: <defaults>
</compile_context>

<pallas_src>
import jax
import jax.numpy as jnp
from jax.experimental import pallas as pl
from jax.experimental.pallas import tpu as pltpu


# ----------------------------------------------------------------------------------------
# Kernel 1: fused image normalization   out = img * (1/(255*std)) - mean/std
# ----------------------------------------------------------------------------------------
def _make_normalize_kernel(scale, bias):
    def kernel(img_ref, out_ref):
        x = img_ref[...].astype(jnp.float32)       # uint8 / bf16 / f32 -> f32 in-kernel
        for c in range(len(scale)):                # static 3-channel loop, fused mul + sub
            out_ref[:, c] = x[:, c] * scale[c] - bias[c]
    return kernel


def normalize_images(images, pixel_mean, pixel_std):
    """(x/255 - mean)/std computed as x*scale - bias.  Accepts uint8/bf16/f32 input."""
    B, C, H, W = images.shape
    HW = H * W
    # lane-dense layout: fold spatial dims into (HW//128, 128) tiles when possible
    if HW % 128 == 0:
        x = images.reshape(B, C, HW // 128, 128)
    else:
        x = images                                  # fallback: W on the lane axis
    _, _, S, L = x.shape

    scale = tuple(1.0 / (255.0 * float(s)) for s in pixel_std)
    bias = tuple(float(m) / float(s) for m, s in zip(pixel_mean, pixel_std))

    out = pl.pallas_call(
        _make_normalize_kernel(scale, bias),
        out_shape=jax.ShapeDtypeStruct((B, C, S, L), jnp.float32),
        grid=(B,),
        in_specs=[pl.BlockSpec((1, C, S, L), lambda b: (b, 0, 0, 0))],
        out_specs=pl.BlockSpec((1, C, S, L), lambda b: (b, 0, 0, 0)),
        compiler_params=pltpu.CompilerParams(dimension_semantics=("parallel",)),
    )(x)
    return out.reshape(B, C, H, W)


# ----------------------------------------------------------------------------------------
# Kernel 2: fused ct_focal_loss + box decode + GIoU, per-batch partial sums.
#   out[b, :, 0] = [pos_loss_sum, neg_loss_sum, num_pos, sum((1-giou)*w), sum(w), 0, 0, 0]
# ----------------------------------------------------------------------------------------
def _fused_loss_kernel(base_ref, score_ref, hm_ref, wh_ref, box_ref, w_ref, out_ref):
    # --- ct_focal_loss terms (prediction clamp from losses()) ---------------------------
    pred = jnp.clip(score_ref[...].astype(jnp.float32), 1e-4, 1.0 - 1e-4)  # (1, C, HW)
    gt = hm_ref[...].astype(jnp.float32)

    pos_inds = (gt == 1.0).astype(jnp.float32)
    neg_inds = (gt < 1.0).astype(jnp.float32)
    neg_weights = (1.0 - gt) ** 4

    pos_loss = -jnp.log(pred) * (1.0 - pred) ** 2 * pos_inds
    neg_loss = -jnp.log(1.0 - pred) * pred ** 2 * neg_weights * neg_inds

    pos_sum = jnp.sum(pos_loss)
    neg_sum = jnp.sum(neg_loss)
    num_pos = jnp.sum(pos_inds)

    # --- box decode (base_loc +/- wh) + GIoU --------------------------------------------
    base = base_ref[...]                              # (2, HW) f32, grid-invariant input
    sx = base[0:1]                                    # (1, HW)
    sy = base[1:2]

    wh = wh_ref[...].astype(jnp.float32)              # (1, 4, HW)
    gtb = box_ref[...].astype(jnp.float32)            # (1, 4, HW)
    wv = w_ref[...].astype(jnp.float32)[:, 0]         # (1, HW)

    px1 = sx - wh[:, 0]
    py1 = sy - wh[:, 1]
    px2 = sx + wh[:, 2]
    py2 = sy + wh[:, 3]
    gx1, gy1, gx2, gy2 = gtb[:, 0], gtb[:, 1], gtb[:, 2], gtb[:, 3]

    iw = jnp.maximum(jnp.minimum(px2, gx2) - jnp.maximum(px1, gx1) + 1.0, 0.0)
    ih = jnp.maximum(jnp.minimum(py2, gy2) - jnp.maximum(py1, gy1) + 1.0, 0.0)
    ew = jnp.maximum(jnp.maximum(px2, gx2) - jnp.minimum(px1, gx1) + 1.0, 0.0)
    eh = jnp.maximum(jnp.maximum(py2, gy2) - jnp.minimum(py1, gy1) + 1.0, 0.0)

    overlap = iw * ih
    ap = (px2 - px1 + 1.0) * (py2 - py1 + 1.0)
    ag = (gx2 - gx1 + 1.0) * (gy2 - gy1 + 1.0)
    u = ap + ag - overlap
    enclose = ew * eh
    # EUP reciprocals instead of VALU divides; denominators are >= 1 by the +1 box convention
    gious = overlap * pl.reciprocal(u, approx=True) \
        - (enclose - u) * pl.reciprocal(enclose, approx=True)
    iou_dist = 1.0 - gious

    contrib = jnp.where(wv > 0.0, iou_dist * wv, 0.0)   # masked positions drop out
    dist_sum = jnp.sum(contrib)
    w_sum = jnp.sum(wv)

    # --- pack 5 per-batch partial sums into the (1, 8, 128) output block ----------------
    row = jax.lax.broadcasted_iota(jnp.int32, (1, 8, 128), 1)
    blk = jnp.zeros((1, 8, 128), jnp.float32)
    blk = jnp.where(row == 0, pos_sum, blk)
    blk = jnp.where(row == 1, neg_sum, blk)
    blk = jnp.where(row == 2, num_pos, blk)
    blk = jnp.where(row == 3, dist_sum, blk)
    blk = jnp.where(row == 4, w_sum, blk)
    out_ref[...] = blk


def fused_loss_partials(base_loc, pred_score, gt_heatmap, pred_wh, gt_box, weight):
    """Inputs already flattened to (..., H*W); returns (B, 8, 128) per-batch partial sums."""
    B, C, HW = pred_score.shape
    # TODO(synk): for production shapes (e.g. C=80 classes on a 128x128 heatmap) tile the
    # class axis (grid dim over C with a (1, Cb, HW) block) and set vmem_limit_bytes to fit
    # v5e's 16 MiB / v7x's 32 MiB default scoped VMEM; the demo shapes fit comfortably.
    return pl.pallas_call(
        _fused_loss_kernel,
        out_shape=jax.ShapeDtypeStruct((B, 8, 128), jnp.float32),
        grid=(B,),
        in_specs=[
            pl.BlockSpec((2, HW), lambda b: (0, 0)),         # base_loc (grid-invariant)
            pl.BlockSpec((1, C, HW), lambda b: (b, 0, 0)),   # pred cls score
            pl.BlockSpec((1, C, HW), lambda b: (b, 0, 0)),   # gt heatmap
            pl.BlockSpec((1, 4, HW), lambda b: (b, 0, 0)),   # pred wh
            pl.BlockSpec((1, 4, HW), lambda b: (b, 0, 0)),   # gt boxes
            pl.BlockSpec((1, 1, HW), lambda b: (b, 0, 0)),   # reg weight
        ],
        out_specs=pl.BlockSpec((1, 8, 128), lambda b: (b, 0, 0)),
        compiler_params=pltpu.CompilerParams(dimension_semantics=("parallel",)),
    )(base_loc, pred_score, gt_heatmap, pred_wh, gt_box, weight)


def _make_base_loc(H, W, base_step):
    sx = jnp.arange(W, dtype=jnp.float32) * float(base_step)
    sy = jnp.arange(H, dtype=jnp.float32) * float(base_step)
    shift_y, shift_x = jnp.meshgrid(sy, sx, indexing='ij')
    return jnp.stack([shift_x, shift_y], axis=0).reshape(2, H * W)


# ----------------------------------------------------------------------------------------
# CenterNet (training-path) wrapper
# ----------------------------------------------------------------------------------------
class CenterNetPallas:
    def __init__(self, num_classes=4, down_scale=4, cls_weight=1.0, wh_weight=0.1,
                 pixel_mean=(103.530, 116.280, 123.675), pixel_std=(57.375, 57.120, 58.395)):
        self.num_classes = num_classes
        self.down_scale = down_scale
        self.cls_weight = cls_weight
        self.wh_weight = wh_weight
        self.pixel_mean = pixel_mean
        self.pixel_std = pixel_std

    def preprocess_image(self, images):
        return normalize_images(images, self.pixel_mean, self.pixel_std)

    def losses(self, pred_dict, gt_dict):
        pred_score = pred_dict['cls']                      # (B, C, H, W)
        pred_wh = pred_dict['wh']                          # (B, 4, H, W)
        gt_heatmap = gt_dict['gt_heatmap']                 # (B, C, H, W)
        gt_reg_weight = gt_dict['gt_reg_weight']           # (B, 1, H, W)
        gt_box = gt_dict['gt_box']                         # (B, 4, H, W)

        B, C, H, W = pred_score.shape
        HW = H * W
        base_loc = _make_base_loc(H, W, self.down_scale)

        partials = fused_loss_partials(
            base_loc,
            pred_score.reshape(B, C, HW),
            gt_heatmap.reshape(B, C, HW),
            pred_wh.reshape(B, 4, HW),
            gt_box.reshape(B, 4, HW),
            gt_reg_weight.reshape(B, 1, HW),
        )
        sums = jnp.sum(partials[:, :, 0], axis=0)          # tiny (B, 8) reduce in plain JAX
        pos_sum, neg_sum, num_pos = sums[0], sums[1], sums[2]
        dist_sum, w_sum = sums[3], sums[4]

        loss_cls = jnp.where(num_pos == 0, neg_sum, (pos_sum + neg_sum) / num_pos)
        loss_wh = dist_sum / (w_sum + 0.0001)
        return {'loss_cls': loss_cls * self.cls_weight,
                'loss_box_wh': loss_wh * self.wh_weight}

    def forward(self, images, pred_dict, gt_dict):
        # TODO(synk): backbone / CenternetDeconv / CenternetHead / CenterNetGT.generate are
        # external registry modules not defined in the reference source, so pred_dict /
        # gt_dict are supplied directly.  The normalized image would only feed that external
        # backbone, so it is not computed here (dead HBM traffic); call
        # self.preprocess_image(images) explicitly when a backbone is attached.
        del images
        return self.losses(pred_dict, gt_dict)


# ----------------------------------------------------------------------------------------
# Pure-JAX reference for correctness check
# ----------------------------------------------------------------------------------------
def _ref_losses(pred_score, pred_wh, gt_heatmap, gt_reg_weight, gt_box,
                down_scale, cls_weight, wh_weight):
    pred = jnp.clip(pred_score, 1e-4, 1.0 - 1e-4)
    pos = (gt_heatmap == 1.0).astype(jnp.float32)
    neg = (gt_heatmap < 1.0).astype(jnp.float32)
    negw = (1.0 - gt_heatmap) ** 4
    pos_loss = (-jnp.log(pred) * (1.0 - pred) ** 2 * pos).sum()
    neg_loss = (-jnp.log(1.0 - pred) * pred ** 2 * negw * neg).sum()
    num_pos = pos.sum()
    loss_cls = jnp.where(num_pos == 0, neg_loss, (pos_loss + neg_loss) / num_pos)

    B, _, H, W = pred_wh.shape
    sx = jnp.arange(W, dtype=jnp.float32) * down_scale
    sy = jnp.arange(H, dtype=jnp.float32) * down_scale
    shift_y, shift_x = jnp.meshgrid(sy, sx, indexing='ij')
    px1 = shift_x[None] - pred_wh[:, 0]
    py1 = shift_y[None] - pred_wh[:, 1]
    px2 = shift_x[None] + pred_wh[:, 2]
    py2 = shift_y[None] + pred_wh[:, 3]
    gx1, gy1, gx2, gy2 = gt_box[:, 0], gt_box[:, 1], gt_box[:, 2], gt_box[:, 3]
    iw = jnp.maximum(jnp.minimum(px2, gx2) - jnp.maximum(px1, gx1) + 1, 0)
    ih = jnp.maximum(jnp.minimum(py2, gy2) - jnp.maximum(py1, gy1) + 1, 0)
    ew = jnp.maximum(jnp.maximum(px2, gx2) - jnp.minimum(px1, gx1) + 1, 0)
    eh = jnp.maximum(jnp.maximum(py2, gy2) - jnp.minimum(py1, gy1) + 1, 0)
    overlap = iw * ih
    ap = (px2 - px1 + 1) * (py2 - py1 + 1)
    ag = (gx2 - gx1 + 1) * (gy2 - gy1 + 1)
    u = ap + ag - overlap
    gious = overlap / u - (ew * eh - u) / (ew * eh)
    dist = 1.0 - gious
    w = gt_reg_weight.reshape(B, H, W)
    contrib = jnp.where(w > 0, dist * w, 0.0)
    avg_factor = w.sum() + 0.0001
    loss_wh = contrib.sum() / avg_factor
    return loss_cls * cls_weight, loss_wh * wh_weight


if __name__ == "__main__":
    key = jax.random.PRNGKey(0)
    k_img, k_cls, k_wh, k_hm, k_bx = jax.random.split(key, 5)

    B, C, H, W = 2, 4, 16, 16
    down_scale = 4

    # uint8 images (as produced by the dataloader); the normalize kernel upcasts in VMEM.
    images = jax.random.randint(k_img, (B, 3, 64, 64), 0, 256,
                                dtype=jnp.int32).astype(jnp.uint8)

    pred_score = jax.nn.sigmoid(jax.random.normal(k_cls, (B, C, H, W), jnp.float32))
    pred_wh = jnp.abs(jax.random.normal(k_wh, (B, 4, H, W), jnp.float32)) * 8.0

    gt_heatmap = jax.random.uniform(k_hm, (B, C, H, W), jnp.float32) * 0.9
    gt_heatmap = gt_heatmap.at[:, :, ::8, ::8].set(1.0)          # exact positives
    gt_reg_weight = (jnp.max(gt_heatmap, axis=1, keepdims=True) == 1.0).astype(jnp.float32)

    bx = jnp.abs(jax.random.normal(k_bx, (B, 4, H, W), jnp.float32)) * 6.0
    sx = jnp.arange(W, dtype=jnp.float32) * down_scale
    sy = jnp.arange(H, dtype=jnp.float32) * down_scale
    shift_y, shift_x = jnp.meshgrid(sy, sx, indexing='ij')
    gt_box = jnp.stack([shift_x[None] - bx[:, 0], shift_y[None] - bx[:, 1],
                        shift_x[None] + bx[:, 2], shift_y[None] + bx[:, 3]], axis=1)

    model = CenterNetPallas(num_classes=C, down_scale=down_scale,
                            cls_weight=1.0, wh_weight=0.1)

    pred_dict = {'cls': pred_score, 'wh': pred_wh}
    gt_dict = {'gt_heatmap': gt_heatmap, 'gt_reg_weight': gt_reg_weight, 'gt_box': gt_box}

    losses = model.forward(images, pred_dict, gt_dict)
    losses = jax.tree_util.tree_map(jax.block_until_ready, losses)

    ref_cls, ref_wh = _ref_losses(pred_score, pred_wh, gt_heatmap, gt_reg_weight, gt_box,
                                  down_scale, 1.0, 0.1)
    assert jnp.allclose(losses['loss_cls'], ref_cls, rtol=1e-3, atol=1e-4), (
        losses['loss_cls'], ref_cls)
    # slightly looser for the box loss: pl.reciprocal(approx=True) in the GIoU body
    assert jnp.allclose(losses['loss_box_wh'], ref_wh, rtol=3e-3, atol=3e-4), (
        losses['loss_box_wh'], ref_wh)

    # normalization kernel vs (x/255 - mean)/std
    norm = jax.block_until_ready(model.preprocess_image(images))
    mean = jnp.array(model.pixel_mean, jnp.float32).reshape(1, 3, 1, 1)
    std = jnp.array(model.pixel_std, jnp.float32).reshape(1, 3, 1, 1)
    ref_norm = (images.astype(jnp.float32) / 255.0 - mean) / std
    assert jnp.allclose(norm, ref_norm, rtol=1e-5, atol=1e-5)

    print("KERNEL_OK")
</pallas_src>

<mosaic_0001>
module attributes {stable_mosaic.version = 11 : i64} {
  func.func @_fused_loss_kernel(%arg0: i32, %arg1: memref<2x256xf32, #tpu.memory_space<vmem>>, %arg2: memref<1x4x256xf32, #tpu.memory_space<vmem>>, %arg3: memref<1x4x256xf32, #tpu.memory_space<vmem>>, %arg4: memref<1x4x256xf32, #tpu.memory_space<vmem>>, %arg5: memref<1x4x256xf32, #tpu.memory_space<vmem>>, %arg6: memref<1x1x256xf32, #tpu.memory_space<vmem>>, %arg7: memref<1x8x128xf32, #tpu.memory_space<vmem>>) attributes {dimension_semantics = [#tpu.dimension_semantics<parallel>], iteration_bounds = array<i64: 2>, scalar_prefetch = 0 : i64, scratch_operands = 0 : i64, tpu.core_type = #tpu.core_type<tc>, window_params = [{pipeline_mode = #tpu.pipeline_mode<synchronous>, transform_indices = @transform_0, window_bounds = array<i64: 2, 256>}, {transform_indices = @transform_1, window_bounds = array<i64: 1, 4, 256>}, {transform_indices = @transform_2, window_bounds = array<i64: 1, 4, 256>}, {transform_indices = @transform_3, window_bounds = array<i64: 1, 4, 256>}, {transform_indices = @transform_4, window_bounds = array<i64: 1, 4, 256>}, {transform_indices = @transform_5, window_bounds = array<i64: 1, 1, 256>}, {transform_indices = @transform_6, window_bounds = array<i64: 1, 8, 128>}]} {
    %c0 = arith.constant 0 : index
    %c0_0 = arith.constant 0 : index
    %c0_1 = arith.constant 0 : index
    %0 = vector.load %arg2[%c0, %c0_0, %c0_1] : memref<1x4x256xf32, #tpu.memory_space<vmem>>, vector<1x4x256xf32>
    %cst = arith.constant 9.99999974E-5 : f32
    %cst_2 = arith.constant 0.999899983 : f32
    %1 = vector.broadcast %cst : f32 to vector<1x4x256xf32>
    %2 = arith.maximumf %1, %0 : vector<1x4x256xf32>
    %3 = vector.broadcast %cst_2 : f32 to vector<1x4x256xf32>
    %4 = arith.minimumf %3, %2 : vector<1x4x256xf32>
    %c0_3 = arith.constant 0 : index
    %c0_4 = arith.constant 0 : index
    %c0_5 = arith.constant 0 : index
    %5 = vector.load %arg3[%c0_3, %c0_4, %c0_5] : memref<1x4x256xf32, #tpu.memory_space<vmem>>, vector<1x4x256xf32>
    %cst_6 = arith.constant 1.000000e+00 : f32
    %6 = vector.broadcast %cst_6 : f32 to vector<1x4x256xf32>
    %7 = arith.cmpf oeq, %5, %6 : vector<1x4x256xf32>
    %8 = arith.extui %7 : vector<1x4x256xi1> to vector<1x4x256xi32>
    %9 = arith.sitofp %8 : vector<1x4x256xi32> to vector<1x4x256xf32>
    %cst_7 = arith.constant 1.000000e+00 : f32
    %10 = vector.broadcast %cst_7 : f32 to vector<1x4x256xf32>
    %11 = arith.cmpf olt, %5, %10 : vector<1x4x256xf32>
    %12 = arith.extui %11 : vector<1x4x256xi1> to vector<1x4x256xi32>
    %13 = arith.sitofp %12 : vector<1x4x256xi32> to vector<1x4x256xf32>
    %cst_8 = arith.constant 1.000000e+00 : f32
    %14 = vector.broadcast %cst_8 : f32 to vector<1x4x256xf32>
    %15 = arith.subf %14, %5 : vector<1x4x256xf32>
    %16 = arith.mulf %15, %15 : vector<1x4x256xf32>
    %17 = arith.mulf %16, %16 : vector<1x4x256xf32>
    %18 = math.log %4 : vector<1x4x256xf32>
    %cst_9 = arith.constant 0.000000e+00 : f32
    %19 = vector.broadcast %cst_9 : f32 to vector<1x4x256xf32>
    %20 = arith.subf %19, %18 : vector<1x4x256xf32>
    %cst_10 = arith.constant 1.000000e+00 : f32
    %21 = vector.broadcast %cst_10 : f32 to vector<1x4x256xf32>
    %22 = arith.subf %21, %4 : vector<1x4x256xf32>
    %23 = arith.mulf %22, %22 : vector<1x4x256xf32>
    %24 = arith.mulf %20, %23 : vector<1x4x256xf32>
    %25 = arith.mulf %24, %9 : vector<1x4x256xf32>
    %cst_11 = arith.constant 1.000000e+00 : f32
    %26 = vector.broadcast %cst_11 : f32 to vector<1x4x256xf32>
    %27 = arith.subf %26, %4 : vector<1x4x256xf32>
    %28 = math.log %27 : vector<1x4x256xf32>
    %cst_12 = arith.constant 0.000000e+00 : f32
    %29 = vector.broadcast %cst_12 : f32 to vector<1x4x256xf32>
    %30 = arith.subf %29, %28 : vector<1x4x256xf32>
    %31 = arith.mulf %4, %4 : vector<1x4x256xf32>
    %32 = arith.mulf %30, %31 : vector<1x4x256xf32>
    %33 = arith.mulf %32, %17 : vector<1x4x256xf32>
    %34 = arith.mulf %33, %13 : vector<1x4x256xf32>
    %35 = vector.shape_cast %25 : vector<1x4x256xf32> to vector<1x1x4x256xf32>
    %cst_13 = arith.constant dense<0.000000e+00> : vector<1xf32>
    %36 = vector.multi_reduction <add>, %35, %cst_13 [1, 2, 3] : vector<1x1x4x256xf32> to vector<1xf32>
    %37 = vector.shape_cast %36 : vector<1xf32> to vector<1x1x1x1xf32>
    %38 = vector.extract %37[0, 0, 0, 0] : f32 from vector<1x1x1x1xf32>
    %39 = vector.shape_cast %34 : vector<1x4x256xf32> to vector<1x1x4x256xf32>
    %cst_14 = arith.constant dense<0.000000e+00> : vector<1xf32>
    %40 = vector.multi_reduction <add>, %39, %cst_14 [1, 2, 3] : vector<1x1x4x256xf32> to vector<1xf32>
    %41 = vector.shape_cast %40 : vector<1xf32> to vector<1x1x1x1xf32>
    %42 = vector.extract %41[0, 0, 0, 0] : f32 from vector<1x1x1x1xf32>
    %43 = vector.shape_cast %9 : vector<1x4x256xf32> to vector<1x1x4x256xf32>
    %cst_15 = arith.constant dense<0.000000e+00> : vector<1xf32>
    %44 = vector.multi_reduction <add>, %43, %cst_15 [1, 2, 3] : vector<1x1x4x256xf32> to vector<1xf32>
    %45 = vector.shape_cast %44 : vector<1xf32> to vector<1x1x1x1xf32>
    %46 = vector.extract %45[0, 0, 0, 0] : f32 from vector<1x1x1x1xf32>
    %c0_16 = arith.constant 0 : index
    %c0_17 = arith.constant 0 : index
    %47 = vector.load %arg1[%c0_16, %c0_17] : memref<2x256xf32, #tpu.memory_space<vmem>>, vector<2x256xf32>
    %48 = vector.extract_strided_slice %47 {offsets = [0, 0], sizes = [1, 256], strides = [1, 1]} : vector<2x256xf32> to vector<1x256xf32>
    %49 = vector.extract_strided_slice %47 {offsets = [1, 0], sizes = [1, 256], strides = [1, 1]} : vector<2x256xf32> to vector<1x256xf32>
    %c0_18 = arith.constant 0 : index
    %c0_19 = arith.constant 0 : index
    %c0_20 = arith.constant 0 : index
    %50 = vector.load %arg4[%c0_18, %c0_19, %c0_20] : memref<1x4x256xf32, #tpu.memory_space<vmem>>, vector<1x4x256xf32>
    %c0_21 = arith.constant 0 : index
    %c0_22 = arith.constant 0 : index
    %c0_23 = arith.constant 0 : index
    %51 = vector.load %arg5[%c0_21, %c0_22, %c0_23] : memref<1x4x256xf32, #tpu.memory_space<vmem>>, vector<1x4x256xf32>
    %c0_24 = arith.constant 0 : index
    %c0_25 = arith.constant 0 : index
    %c0_26 = arith.constant 0 : index
    %52 = vector.load %arg6[%c0_24, %c0_25, %c0_26] : memref<1x1x256xf32, #tpu.memory_space<vmem>>, vector<1x1x256xf32>
    %53 = vector.shape_cast %52 : vector<1x1x256xf32> to vector<1x256xf32>
    %54 = vector.extract_strided_slice %50 {offsets = [0, 0, 0], sizes = [1, 1, 256], strides = [1, 1, 1]} : vector<1x4x256xf32> to vector<1x1x256xf32>
    %55 = vector.shape_cast %54 : vector<1x1x256xf32> to vector<1x256xf32>
    %56 = arith.subf %48, %55 : vector<1x256xf32>
    %57 = vector.extract_strided_slice %50 {offsets = [0, 1, 0], sizes = [1, 1, 256], strides = [1, 1, 1]} : vector<1x4x256xf32> to vector<1x1x256xf32>
    %58 = vector.shape_cast %57 : vector<1x1x256xf32> to vector<1x256xf32>
    %59 = arith.subf %49, %58 : vector<1x256xf32>
    %60 = vector.extract_strided_slice %50 {offsets = [0, 2, 0], sizes = [1, 1, 256], strides = [1, 1, 1]} : vector<1x4x256xf32> to vector<1x1x256xf32>
    %61 = vector.shape_cast %60 : vector<1x1x256xf32> to vector<1x256xf32>
    %62 = arith.addf %48, %61 : vector<1x256xf32>
    %63 = vector.extract_strided_slice %50 {offsets = [0, 3, 0], sizes = [1, 1, 256], strides = [1, 1, 1]} : vector<1x4x256xf32> to vector<1x1x256xf32>
    %64 = vector.shape_cast %63 : vector<1x1x256xf32> to vector<1x256xf32>
    %65 = arith.addf %49, %64 : vector<1x256xf32>
    %66 = vector.extract_strided_slice %51 {offsets = [0, 0, 0], sizes = [1, 1, 256], strides = [1, 1, 1]} : vector<1x4x256xf32> to vector<1x1x256xf32>
    %67 = vector.shape_cast %66 : vector<1x1x256xf32> to vector<1x256xf32>
    %68 = vector.extract_strided_slice %51 {offsets = [0, 1, 0], sizes = [1, 1, 256], strides = [1, 1, 1]} : vector<1x4x256xf32> to vector<1x1x256xf32>
    %69 = vector.shape_cast %68 : vector<1x1x256xf32> to vector<1x256xf32>
    %70 = vector.extract_strided_slice %51 {offsets = [0, 2, 0], sizes = [1, 1, 256], strides = [1, 1, 1]} : vector<1x4x256xf32> to vector<1x1x256xf32>
    %71 = vector.shape_cast %70 : vector<1x1x256xf32> to vector<1x256xf32>
    %72 = vector.extract_strided_slice %51 {offsets = [0, 3, 0], sizes = [1, 1, 256], strides = [1, 1, 1]} : vector<1x4x256xf32> to vector<1x1x256xf32>
    %73 = vector.shape_cast %72 : vector<1x1x256xf32> to vector<1x256xf32>
    %74 = arith.minimumf %62, %71 : vector<1x256xf32>
    %75 = arith.maximumf %56, %67 : vector<1x256xf32>
    %76 = arith.subf %74, %75 : vector<1x256xf32>
    %cst_27 = arith.constant 1.000000e+00 : f32
    %77 = vector.broadcast %cst_27 : f32 to vector<1x256xf32>
    %78 = arith.addf %76, %77 : vector<1x256xf32>
    %cst_28 = arith.constant 0.000000e+00 : f32
    %79 = vector.broadcast %cst_28 : f32 to vector<1x256xf32>
    %80 = arith.maximumf %78, %79 : vector<1x256xf32>
    %81 = arith.minimumf %65, %73 : vector<1x256xf32>
    %82 = arith.maximumf %59, %69 : vector<1x256xf32>
    %83 = arith.subf %81, %82 : vector<1x256xf32>
    %cst_29 = arith.constant 1.000000e+00 : f32
    %84 = vector.broadcast %cst_29 : f32 to vector<1x256xf32>
    %85 = arith.addf %83, %84 : vector<1x256xf32>
    %cst_30 = arith.constant 0.000000e+00 : f32
    %86 = vector.broadcast %cst_30 : f32 to vector<1x256xf32>
    %87 = arith.maximumf %85, %86 : vector<1x256xf32>
    %88 = arith.maximumf %62, %71 : vector<1x256xf32>
    %89 = arith.minimumf %56, %67 : vector<1x256xf32>
    %90 = arith.subf %88, %89 : vector<1x256xf32>
    %cst_31 = arith.constant 1.000000e+00 : f32
    %91 = vector.broadcast %cst_31 : f32 to vector<1x256xf32>
    %92 = arith.addf %90, %91 : vector<1x256xf32>
    %cst_32 = arith.constant 0.000000e+00 : f32
    %93 = vector.broadcast %cst_32 : f32 to vector<1x256xf32>
    %94 = arith.maximumf %92, %93 : vector<1x256xf32>
    %95 = arith.maximumf %65, %73 : vector<1x256xf32>
    %96 = arith.minimumf %59, %69 : vector<1x256xf32>
    %97 = arith.subf %95, %96 : vector<1x256xf32>
    %cst_33 = arith.constant 1.000000e+00 : f32
    %98 = vector.broadcast %cst_33 : f32 to vector<1x256xf32>
    %99 = arith.addf %97, %98 : vector<1x256xf32>
    %cst_34 = arith.constant 0.000000e+00 : f32
    %100 = vector.broadcast %cst_34 : f32 to vector<1x256xf32>
    %101 = arith.maximumf %99, %100 : vector<1x256xf32>
    %102 = arith.mulf %80, %87 : vector<1x256xf32>
    %103 = arith.subf %62, %56 : vector<1x256xf32>
    %cst_35 = arith.constant 1.000000e+00 : f32
    %104 = vector.broadcast %cst_35 : f32 to vector<1x256xf32>
    %105 = arith.addf %103, %104 : vector<1x256xf32>
    %106 = arith.subf %65, %59 : vector<1x256xf32>
    %cst_36 = arith.constant 1.000000e+00 : f32
    %107 = vector.broadcast %cst_36 : f32 to vector<1x256xf32>
    %108 = arith.addf %106, %107 : vector<1x256xf32>
    %109 = arith.mulf %105, %108 : vector<1x256xf32>
    %110 = arith.subf %71, %67 : vector<1x256xf32>
    %cst_37 = arith.constant 1.000000e+00 : f32
    %111 = vector.broadcast %cst_37 : f32 to vector<1x256xf32>
    %112 = arith.addf %110, %111 : vector<1x256xf32>
    %113 = arith.subf %73, %69 : vector<1x256xf32>
    %cst_38 = arith.constant 1.000000e+00 : f32
    %114 = vector.broadcast %cst_38 : f32 to vector<1x256xf32>
    %115 = arith.addf %113, %114 : vector<1x256xf32>
    %116 = arith.mulf %112, %115 : vector<1x256xf32>
    %117 = arith.addf %109, %116 : vector<1x256xf32>
    %118 = arith.subf %117, %102 : vector<1x256xf32>
    %119 = arith.mulf %94, %101 : vector<1x256xf32>
    %120 = tpu.reciprocal %118 {approx = true} : vector<1x256xf32> -> vector<1x256xf32>
    %121 = arith.mulf %102, %120 : vector<1x256xf32>
    %122 = arith.subf %119, %118 : vector<1x256xf32>
    %123 = tpu.reciprocal %119 {approx = true} : vector<1x256xf32> -> vector<1x256xf32>
    %124 = arith.mulf %122, %123 : vector<1x256xf32>
    %125 = arith.subf %121, %124 : vector<1x256xf32>
    %cst_39 = arith.constant 1.000000e+00 : f32
    %126 = vector.broadcast %cst_39 : f32 to vector<1x256xf32>
    %127 = arith.subf %126, %125 : vector<1x256xf32>
    %cst_40 = arith.constant 0.000000e+00 : f32
    %128 = vector.broadcast %cst_40 : f32 to vector<1x256xf32>
    %129 = arith.cmpf ogt, %53, %128 : vector<1x256xf32>
    %130 = arith.mulf %127, %53 : vector<1x256xf32>
    %cst_41 = arith.constant 0.000000e+00 : f32
    %131 = vector.broadcast %cst_41 : f32 to vector<1x256xf32>
    %132 = arith.select %129, %130, %131 : vector<1x256xi1>, vector<1x256xf32>
    %133 = vector.shape_cast %132 : vector<1x256xf32> to vector<1x1x256xf32>
    %cst_42 = arith.constant dense<0.000000e+00> : vector<1xf32>
    %134 = vector.multi_reduction <add>, %133, %cst_42 [1, 2] : vector<1x1x256xf32> to vector<1xf32>
    %135 = vector.shape_cast %134 : vector<1xf32> to vector<1x1x1xf32>
    %136 = vector.extract %135[0, 0, 0] : f32 from vector<1x1x1xf32>
    %137 = vector.shape_cast %53 : vector<1x256xf32> to vector<1x1x256xf32>
    %cst_43 = arith.constant dense<0.000000e+00> : vector<1xf32>
    %138 = vector.multi_reduction <add>, %137, %cst_43 [1, 2] : vector<1x1x256xf32> to vector<1xf32>
    %139 = vector.shape_cast %138 : vector<1xf32> to vector<1x1x1xf32>
    %140 = vector.extract %139[0, 0, 0] : f32 from vector<1x1x1xf32>
    %141 = tpu.iota {dimensions = array<i32: 1>} : vector<1x8x128xi32>
    %cst_44 = arith.constant 0.000000e+00 : f32
    %142 = vector.broadcast %cst_44 : f32 to vector<1x8x128xf32>
    %c0_i32 = arith.constant 0 : i32
    %143 = vector.broadcast %c0_i32 : i32 to vector<1x8x128xi32>
    %144 = arith.cmpi eq, %141, %143 : vector<1x8x128xi32>
    %145 = vector.broadcast %38 : f32 to vector<1x8x128xf32>
    %146 = arith.select %144, %145, %142 : vector<1x8x128xi1>, vector<1x8x128xf32>
    %c1_i32 = arith.constant 1 : i32
    %147 = vector.broadcast %c1_i32 : i32 to vector<1x8x128xi32>
    %148 = arith.cmpi eq, %141, %147 : vector<1x8x128xi32>
    %149 = vector.broadcast %42 : f32 to vector<1x8x128xf32>
    %150 = arith.select %148, %149, %146 : vector<1x8x128xi1>, vector<1x8x128xf32>
    %c2_i32 = arith.constant 2 : i32
    %151 = vector.broadcast %c2_i32 : i32 to vector<1x8x128xi32>
    %152 = arith.cmpi eq, %141, %151 : vector<1x8x128xi32>
    %153 = vector.broadcast %46 : f32 to vector<1x8x128xf32>
    %154 = arith.select %152, %153, %150 : vector<1x8x128xi1>, vector<1x8x128xf32>
    %c3_i32 = arith.constant 3 : i32
    %155 = vector.broadcast %c3_i32 : i32 to vector<1x8x128xi32>
    %156 = arith.cmpi eq, %141, %155 : vector<1x8x128xi32>
    %157 = vector.broadcast %136 : f32 to vector<1x8x128xf32>
    %158 = arith.select %156, %157, %154 : vector<1x8x128xi1>, vector<1x8x128xf32>
    %c4_i32 = arith.constant 4 : i32
    %159 = vector.broadcast %c4_i32 : i32 to vector<1x8x128xi32>
    %160 = arith.cmpi eq, %141, %159 : vector<1x8x128xi32>
    %161 = vector.broadcast %140 : f32 to vector<1x8x128xf32>
    %162 = arith.select %160, %161, %158 : vector<1x8x128xi1>, vector<1x8x128xf32>
    %c0_45 = arith.constant 0 : index
    %c0_46 = arith.constant 0 : index
    %c0_47 = arith.constant 0 : index
    %163 = vector.load %arg7[%c0_45, %c0_46, %c0_47] : memref<1x8x128xf32, #tpu.memory_space<vmem>>, vector<1x8x128xf32>
    tpu.vector_store %arg7[%c0_45, %c0_46, %c0_47], %162 {strides = array<i32>} : memref<1x8x128xf32, #tpu.memory_space<vmem>>, vector<1x8x128xf32>,
    return
  }
  func.func @transform_0(%arg0: i32) -> (i32, i32) {
    %c0_i32 = arith.constant 0 : i32
    %c0_i32_0 = arith.constant 0 : i32
    %c0_i32_1 = arith.constant 0 : i32
    return %c0_i32, %c0_i32_0 : i32, i32
  }
  func.func @transform_1(%arg0: i32) -> (i32, i32, i32) {
    %c0_i32 = arith.constant 0 : i32
    %c0_i32_0 = arith.constant 0 : i32
    %c0_i32_1 = arith.constant 0 : i32
    return %arg0, %c0_i32, %c0_i32_0 : i32, i32, i32
  }
  func.func @transform_2(%arg0: i32) -> (i32, i32, i32) {
    %c0_i32 = arith.constant 0 : i32
    %c0_i32_0 = arith.constant 0 : i32
    %c0_i32_1 = arith.constant 0 : i32
    return %arg0, %c0_i32, %c0_i32_0 : i32, i32, i32
  }
  func.func @transform_3(%arg0: i32) -> (i32, i32, i32) {
    %c0_i32 = arith.constant 0 : i32
    %c0_i32_0 = arith.constant 0 : i32
    %c0_i32_1 = arith.constant 0 : i32
    return %arg0, %c0_i32, %c0_i32_0 : i32, i32, i32
  }
  func.func @transform_4(%arg0: i32) -> (i32, i32, i32) {
    %c0_i32 = arith.constant 0 : i32
    %c0_i32_0 = arith.constant 0 : i32
    %c0_i32_1 = arith.constant 0 : i32
    return %arg0, %c0_i32, %c0_i32_0 : i32, i32, i32
  }
  func.func @transform_5(%arg0: i32) -> (i32, i32, i32) {
    %c0_i32 = arith.constant 0 : i32
    %c0_i32_0 = arith.constant 0 : i32
    %c0_i32_1 = arith.constant 0 : i32
    return %arg0, %c0_i32, %c0_i32_0 : i32, i32, i32
  }
  func.func @transform_6(%arg0: i32) -> (i32, i32, i32) {
    %c0_i32 = arith.constant 0 : i32
    %c0_i32_0 = arith.constant 0 : i32
    %c0_i32_1 = arith.constant 0 : i32
    return %arg0, %c0_i32, %c0_i32_0 : i32, i32, i32
  }
}

</mosaic_0001>

<bundles_post_ra>
// kernel: tpu_custom_call.1
= control target key start
LH: loop header
LB: loop body
LE: loop exit
PB: predicated region body
PF: predicated region fallthrough
CT: control target
= control target key end

     0   :  { %s1490_s0 = inlined_call_operand.hbm [shape: f32[2,256], index: 0, kind: input, shape index: {}]   ;;  %s1491_s1 = inlined_call_operand.hbm [shape: f32[2,4,256], index: 1, kind: input, shape index: {}]   ;;  %s1492_s2 = inlined_call_operand.hbm [shape: f32[2,4,256], index: 2, kind: input, shape index: {}]   ;;  %s1493_s3 = inlined_call_operand.hbm [shape: f32[2,4,256], index: 3, kind: input, shape index: {}]   ;;  %s1494_s4 = inlined_call_operand.hbm [shape: f32[2,4,256], index: 4, kind: input, shape index: {}]   ;;  %s1495_s5 = inlined_call_operand.vmem [shape: f32[2,1,256], index: 5, kind: input, shape index: {}]   ;;  %s1496_s6 = inlined_call_operand.hbm [shape: f32[2,8,128], index: 6, kind: output, shape index: {}]  }
   0x1   :  { %1499 = sst [smem:[#allocation18_spill]] %s1490_s0 }
   0x2   :  { %1500 = sst [smem:[#allocation19_spill]] %s1491_s1 }
   0x3   :  { %1501 = sst [smem:[#allocation20_spill]] %s1493_s3 }
   0x4   :  { %11 = vsyncpa [#allocation3], 0 }
   0x5   :  { %12 = vsyncpa [#allocation6], 0 }
   0x6   :  { %14 = vsyncpa [#allocation6 + $0x1], 0 }
   0x7   :  { %15 = vsyncpa [#allocation9], 0 }
   0x8   :  { %17 = vsyncpa [#allocation9 + $0x1], 0 }
   0x9   :  { %18 = vsyncpa [#allocation4], 0 }
   0xa   :  { %20 = vsyncpa [#allocation4 + $0x1], 0  ;;  %s1235_s21 = smov 0   ;;  %s1237_s22 = smov 0  }
   0xb   :  { %s1239_s23 = smov 0   ;;  %s1241_s24 = smov 0  }
   0xc LB: > { %1502 = sst [smem:[#allocation16_spill]] %s1191_s23  ;;  %s1256_s25 = sadd.s32 1, %s1195_s24   ;;  %s1195_s24 = sphi %s1241_s24, %s1520_s24   ;;  %s1191_s23 = sphi %s1239_s23, %s1519_s23   ;;  %s1187_s22 = sphi %s1237_s22, %s1518_s22   ;;  %s1183_s21 = sphi %s1235_s21, %s1517_s21  }
   0xd   : > { %s54_s26 = sadd.s32 1, %s1191_s23  ;;  %s51_s27 = ssub.s32 %s1195_s24, %s1256_s25 }
   0xe   : > { %p61_p0 = scmp.ne.s32.totalorder %s1191_s23, %s1187_s22  ;;  %p52_p1 = scmp.eq.s32.totalorder %s51_s27, 0 }
   0xf   : > { %p62_p2 = scmp.eq.s32.totalorder %s1195_s24, 0  ;;  %p925_p4 = scmp.lt.s32.totalorder %s1195_s24, 2 }
  0x10   : > { %s1267_s28 = scalar_select %p52_p1, %s1191_s23, %s54_s26  }
  0x11   : > { %p63_p5 = por %p62_p2, %p61_p0  ;;  %s233_s29 = sand.u32 1, %s1195_s24  }
  0x12   : > { %1503 = sst [smem:[#allocation17_spill]] %s1267_s28  ;;  %s235_s30 = sand.u32 1, %s1191_s23  }
  0x13   : > { %s1274_s7 = sshll.u32 %s235_s30, 3  ;;  %s1277_s8 = sshll.u32 %s1195_s24, 3 }
  0x14   : > { %s1504_s1 = sld [smem:[#allocation19_spill]]  ;;  %s237_s13 = scalar_lea.vmem [#allocation5], %s1274_s7 }
  0x15   : > { %s246_s14 = sshll.u32 %s237_s13, 4  ;;  %p1286_p6 = pnand %p925_p4, %p63_p5  ;;  %s247_s14 = int_to_ptr.vmem [resolvable:$true] %s246_s14 }
  0x16   : > { %s1506_s3 = sld [smem:[#allocation20_spill]]  ;;  %s1298_s20 = scalar_lea.sflag [#allocation6], %s233_s29 }
  0x17   : > { %p975_p8 = pneg %p1286_p6 }
  0x1a   : > { %s242_s11 = scalar_lea.hbm %s1504_s1, %s1277_s8  ;;  %s978_s10 = scalar_lea.hbm %s1504_s1, 16 }
  0x1b   : > { %s244_s12 = sshll.u32 %s242_s11, 4  ;;  %s245_s12 = int_to_ptr.hbm [resolvable:$true] %s244_s12 }
  0x1c   : > { %s282_s18 = scalar_lea.hbm %s1506_s3, %s1277_s8  ;;  %s971_s26 = sshra.s32 %s245_s12, 4  ;;  %s972_s26 = int_to_ptr.hbm [resolvable:$true] %s971_s26 }
  0x1d   : > { %s1294_s19 = sshll.u32 %s282_s18, 4  ;;  %s973_s27 = scalar_lea.hbm %s972_s26, 8  ;;  %s285_s19 = int_to_ptr.hbm [resolvable:$true] %s1294_s19 }
  0x1e   : > { %p974_p7 = scmp.ne.s32.totalorder %s972_s26, %s973_s27  ;;  %p979_p11 = scmp.lt.s32.totalorder %s972_s26, %s1504_s1 }
  0x1f   : > { %p980_p12 = scmp.lt.s32.totalorder %s978_s10, %s973_s27 }
  0x20   : > { %p976_p9 = pnand %p975_p8, %p974_p7 }
  0x21   : > { %p981_p13 = por %p980_p12, %p979_p11 }
  0x22   : > { %p977_p10 = pneg %p976_p9 }
  0x24   : > { %p982_p1 = pnand %p981_p13, %p977_p10 }
  0x26   : > { %985 = shalt.err (!%p982_p1)
}
  0x27   : > { %910 = dma.hbm_to_vmem [thread:$0]  (!%p1286_p6), %s245_s12, 128, %s247_s14, %s1298_s20  }
  0x28   : > { %s277_s16 = scalar_lea.vmem [#allocation8], %s1274_s7  ;;  %s1318_s18 = scalar_lea.sflag [#allocation9], %s233_s29 }
  0x29   : > { %s286_s17 = sshll.u32 %s277_s16, 4  ;;  %s1001_s26 = sshra.s32 %s285_s19, 4  ;;  %s287_s17 = int_to_ptr.vmem [resolvable:$true] %s286_s17  ;;  %s1002_s26 = int_to_ptr.hbm [resolvable:$true] %s1001_s26 }
  0x2a   : > { %s1003_s27 = scalar_lea.hbm %s1002_s26, 8  ;;  %s1008_s10 = scalar_lea.hbm %s1506_s3, 16 }
  0x2b   : > { %p1004_p2 = scmp.ne.s32.totalorder %s1002_s26, %s1003_s27  ;;  %p1009_p7 = scmp.lt.s32.totalorder %s1002_s26, %s1506_s3 }
  0x2c   : > { %p1010_p9 = scmp.lt.s32.totalorder %s1008_s10, %s1003_s27 }
  0x2d   : > { %p1006_p4 = pnand %p1004_p2, %p975_p8 }
  0x2e   : > { %p1011_p10 = por %p1010_p9, %p1009_p7 }
  0x2f   : > { %p1007_p5 = pneg %p1006_p4 }
  0x31   : > { %p1012_p11 = pnand %p1011_p10, %p1007_p5 }
  0x33   : > { %1015 = shalt.err (!%p1012_p11)
}
  0x34   : > { %916 = dma.hbm_to_vmem [thread:$0]  (!%p1286_p6), %s285_s19, 128, %s287_s17, %s1318_s18  }
  0x35   : > { %s1333_s29 = sadd.s32 4294967295, %s1195_s24   ;;  %s841_s11 = sadd.s32 4294967294, %s1195_s24  }
  0x36   : > { %p67_p12 = scmp.ne.s32.totalorder %s1187_s22, %s1183_s21  ;;  %p1498_p13 = scmp.eq.s32.totalorder %s1333_s29, 0 }
  0x37   : > { %p195_p1 = scmp.eq.s32.totalorder %s1333_s29, 1  ;;  %p201_p2 = scmp.eq.s32.totalorder %s841_s11, 1 }
  0x38   : > { %p842_p4 = scmp.ge.s32.totalorder %s1195_s24, 1  ;;  %p1343_p5 = por %p1498_p13, %p67_p12 }
  0x39   : > { %p1350_p7 = por %p195_p1, %p61_p0  ;;  %p1354_p9 = por %p201_p2, %p67_p12 }
  0x3a   : > { %p208_p10 = scmp.lt.s32.totalorder %s1195_s24, 3  ;;  %s1510_s0 = sld [smem:[#allocation18_spill]] }
  0x3b   : > { %s1197_s9 = smov [#allocation2]   ;;  %s262_s11 = scalar_lea.hbm %s1492_s2, %s1277_s8 }
  0x3c   : > { %p1362_p11 = pnand %p842_p4, %p208_p10  ;;  %s222_s10 = sshll.u32 %s1197_s9, 4  ;;  %s223_s10 = int_to_ptr.vmem [resolvable:$true] %s222_s10 }
  0x3d   : > { %s264_s17 = sshll.u32 %s262_s11, 4  ;;  %s257_s26 = scalar_lea.vmem [#allocation7], %s1274_s7  ;;  %s265_s17 = int_to_ptr.hbm [resolvable:$true] %s264_s17 }
  0x3e   : > { %p903_p0 = pneg %p1362_p11  ;;  %s1061_s1 = sshra.s32 %s265_s17, 4  ;;  %s1062_s1 = int_to_ptr.hbm [resolvable:$true] %s1061_s1 }
  0x3f   : > { %s1063_s3 = scalar_lea.hbm %s1062_s1, 8  ;;  %s1068_s12 = scalar_lea.hbm %s1492_s2, 16 }
  0x40   : > { %s220_s27 = sshll.u32 %s1510_s0, 4  ;;  %p904_p12 = pnand %p903_p0, %p1498_p13  ;;  %s221_s27 = int_to_ptr.hbm [resolvable:$true] %s220_s27 }
  0x41   : > { %s266_s0 = sshll.u32 %s257_s26, 4  ;;  %p1064_p1 = scmp.ne.s32.totalorder %s1062_s1, %s1063_s3  ;;  %s267_s0 = int_to_ptr.vmem [resolvable:$true] %s266_s0 }
  0x42   : > { %906 = dma.hbm_to_vmem [thread:$0]  (!%p904_p12), %s221_s27, 64, %s223_s10, [#allocation3]  }
  0x43   : > { %p1066_p2 = pnand %p1064_p1, %p975_p8  ;;  %p1069_p10 = scmp.lt.s32.totalorder %s1062_s1, %s1492_s2 }
  0x44   : > { %p1070_p0 = scmp.lt.s32.totalorder %s1068_s12, %s1063_s3 }
  0x45   : > { %p1067_p4 = pneg %p1066_p2 }
  0x46   : > { %p1071_p3 = por %p1070_p0, %p1069_p10 }
  0x48   : > { %p1072_p13 = pnand %p1071_p3, %p1067_p4 }
  0x4a   : > { %1075 = shalt.err (!%p1072_p13)
}
  0x4b   : > { %913 = dma.hbm_to_vmem [thread:$0]  (!%p1286_p6), %s265_s17, 128, %s267_s0, %s1298_s20  }
  0x4c   : > { %s302_s28 = scalar_lea.hbm %s1494_s4, %s1277_s8  ;;  %s297_s26 = scalar_lea.vmem [#allocation10], %s1274_s7 }
  0x4d   : > { %s304_s11 = sshll.u32 %s302_s28, 4  ;;  %s306_s9 = sshll.u32 %s297_s26, 4  ;;  %s305_s11 = int_to_ptr.hbm [resolvable:$true] %s304_s11  ;;  %s307_s9 = int_to_ptr.vmem [resolvable:$true] %s306_s9 }
  0x4e   : > { %s1091_s1 = sshra.s32 %s305_s11, 4  ;;  %s1098_s0 = scalar_lea.hbm %s1494_s4, 16  ;;  %s1092_s1 = int_to_ptr.hbm [resolvable:$true] %s1091_s1 }
  0x4f   : > { %s1093_s3 = scalar_lea.hbm %s1092_s1, 8  ;;  %p1099_p1 = scmp.lt.s32.totalorder %s1092_s1, %s1494_s4 }
  0x50   : > { %p1094_p3 = scmp.ne.s32.totalorder %s1092_s1, %s1093_s3  ;;  %p1100_p2 = scmp.lt.s32.totalorder %s1098_s0, %s1093_s3 }
  0x52   : > { %p1096_p13 = pnand %p1094_p3, %p975_p8  ;;  %p1101_p4 = por %p1100_p2, %p1099_p1 }
  0x54   : > { %p1097_p12 = pneg %p1096_p13 }
  0x56   : > { %p1102_p10 = pnand %p1101_p4, %p1097_p12 }
  0x58   : > { %1105 = shalt.err (!%p1102_p10)
}
  0x59   : > { %919 = dma.hbm_to_vmem [thread:$0]  (!%p1286_p6), %s305_s11, 128, %s307_s9, %s1318_s18  }
  0x5a   : > { %322 = sbr.rel (%p1362_p11) target bundleno = 417 (0x1a1), region = 44  ;;  %p1512_p8 = scmp.eq.s32.totalorder (!%p1362_p11), %s1333_s29, 0 }
  0x5f   : > { %1166 = dma.done.wait (%p1512_p8), [#allocation3], 64   ;;  %p1513_p0 = pmov %p1512_p8 }
  0x60   : > { %s329_s7 = sand.u32 1, %s1333_s29   ;;  %s331_s8 = sand.u32 1, %s1187_s22  }
  0x61   : > { %1168 = vsyncadd (%p1513_p0), [#allocation3], 4294967232  ;;  %s1414_s14 = sshll.u32 %s331_s8, 3  ;;  %s330_s15 = scalar_lea.sflag [#allocation6], %s329_s7 }
  0x62   : > { %s333_s18 = scalar_lea.vmem [#allocation5], %s1414_s14 }
  0x63   : > { %1170 = dma.done.wait (%p1343_p5), %s330_s15, 256  }
  0x64   : > { %1172 = vsyncadd (%p1343_p5), %s330_s15, 4294967040  ;;  %s343_s30 = scalar_lea.vmem [#allocation7], %s1414_s14  ;;  %s350_s27 = scalar_lea.sflag [#allocation9], %s329_s7 }
  0x65   : > { %s353_s10 = scalar_lea.vmem [#allocation8], %s1414_s14 }
  0x66   : > { %1174 = dma.done.wait (%p1343_p5), %s350_s27, 256  }
  0x67   : > { %1176 = vsyncadd (%p1343_p5), %s350_s27, 4294967040  ;;  %v416_v0 = vld [vmem:[%s333_s18] sm:$0xff]  ;;  %v419_v4 = vld [vmem:[%s343_s30] sm:$0xff]  ;;  %v1198_v14 = vmov 0.0   ;;  %p412_p6 = scmp.lt.s32.totalorder %s1333_s29, 1  ;;  %vm449_vm2 = vcmask 1043456  }
  0x68   : > { %v417_v1 = vmax.f32 %v416_v0, 0.0001  ;;  %v426_v5 = vsub.f32 1.0, %v419_v4  ;;  %vm420_vm0 = vcmp.eq.f32.partialorder %v419_v4, 1.0  ;;  %vm423_vm1 = vcmp.lt.f32.partialorder %v419_v4, 1.0  ;;  %v499_v40 = vld [vmem:[%s353_s10] sm:$0xff] }
  0x69   : > { %v865_v15 = vsel %vm420_vm0, 1.0, %v1198_v14  ;;  %s413_s13 = scalar_select %p412_p6, %s1333_s29, 1  ;;  %v866_v22 = vsel %vm423_vm1, 1.0, %v1198_v14  ;;  %vm610_vm3 = vcmask 1040384   ;;  %v503_v49 = vrot.slane %v499_v40, 2 }
  0x6a   : > { %v418_v2 = vmin.f32 %v417_v1, 0.9999  ;;  %v427_v7 = vmul.f32 %v426_v5, %v426_v5  ;;  %s363_s1 = scalar_lea.vmem [#allocation10], %s1414_s14  ;;  %vm504_vm4 = vcmask 1041408   ;;  %v498_v51 = vld [vmem:[#allocation2] sm:$0xf] }
  0x6b   : > { %s864_s28 = sshll.u32 %s413_s13, 1  ;;  %v500_v47 = vld [vmem:[%s363_s1] sm:$0xff]  ;;  %v505_v52 = vsel %vm504_vm4, %v499_v40, %v503_v49  ;;  %vm612_vm5 = vcmask 1042434   ;;  %s872_s12 = sshll.u32 %s1333_s29, 3 }
  0x6c   : > { %963 = vlog2.f32 %v418_v2  ;;  %v432_v3 = vsub.f32 1.0, %v418_v2  ;;  %v439_v13 = vmul.f32 %v418_v2, %v418_v2  ;;  %v428_v16 = vmul.f32 %v427_v7, %v427_v7  ;;  %s415_s9 = scalar_lea.vmem %s1495_s5, %s864_s28  ;;  %s679_s7 = scalar_lea.hbm %s1496_s6, %s872_s12 }
  0x6d   : > { %v1434_v29 = vld [vmem:[%s415_s9] sm:$0x3]  ;;  %v524_v53 = vrot.slane %v500_v47, 2  ;;  %v570_v54 = vrot.slane %v500_v47, 6  ;;  %v507_v55 = vsub.f32 %v498_v51, %v505_v52  ;;  %s411_s15 = scalar_lea.vmem [#allocation11], %s1414_s14  ;;  %s683_s30 = sshll.u32 %s679_s7, 4  ;;  %s684_s30 = int_to_ptr.hbm [resolvable:$true] %s683_s30 }
  0x6e   : > { %965 = vlog2.f32 %v432_v3  ;;  %v433_v9 = vmul.f32 %v432_v3, %v432_v3  ;;  %v634_v30 = vperm.slane %v1434_v29, 0  ;;  %v635_v31 = vperm.slane %v1434_v29, 1  ;;  %s681_s18 = sshll.u32 %s411_s15, 4  ;;  %s669_s10 = scalar_lea.sflag [#allocation4], %s331_s8  ;;  %s682_s18 = int_to_ptr.vmem [resolvable:$true] %s681_s18 }
  0x6f   : > { %v525_v57 = vsel %vm504_vm4, %v500_v47, %v524_v53  ;;  %v572_v59 = vsub.f32 %v500_v47, %v570_v54  ;;  %vm598_vm6 = vcmp.gt.f32.partialorder %v1434_v29, 0.0  ;;  %s1135_s13 = sshra.s32 %s684_s30, 4  ;;  %s1141_s26 = scalar_lea.hbm %s1496_s6, 16  ;;  %s1136_s13 = int_to_ptr.hbm [resolvable:$true] %s1135_s13 }
  0x70   : > { %v638_v32 = vsel %vm610_vm3, %v634_v30, 0.0  ;;  %v639_v33 = vsel %vm610_vm3, %v635_v31, 0.0  ;;  %v527_v61 = vmax.f32 %v507_v55, %v525_v57  ;;  %s1137_s28 = scalar_lea.hbm %s1136_s13, 8  ;;  %p1142_p13 = scmp.lt.s32.totalorder %s1136_s13, %s1496_s6 }
  0x71   : > { %v640_v34 = vadd.f32 %v639_v33, %v638_v32  ;;  %v573_v63 = vadd.f32 1.0, %v572_v59  ;;  %p1138_p5 = scmp.ne.s32.totalorder %s1136_s13, %s1137_s28  ;;  %p1143_p12 = scmp.lt.s32.totalorder %s1141_s26, %s1137_s28 }
  0x72   : > { %v964_v6 = vpop.eup %963 }
  0x73   : > { %v430_v8 = vmul.f32 0.6931472, %v964_v6  ;;  %641 = vadd.xlane.f32.xlu2 %v640_v34  ;;  %v869_v3 = vrot.slane %v573_v63, 9  ;;  %v1199_v34 = vmov 857870592   ;;  %p1139_p11 = pnand %p1138_p5, %p1350_p7  ;;  %p1144_p1 = por %p1143_p12, %p1142_p13 }
  0x74   : > { %v966_v10 = vpop.eup %965 }
  0x75   : > { %v431_v11 = vsub.f32 0.0, %v430_v8  ;;  %v437_v12 = vmul.f32 0.6931472, %v966_v10  ;;  %v578_v8 = vmul.f32 %v869_v3, %v573_v63  ;;  %p1140_p3 = pneg %p1139_p11 }
  0x77   : > { %v434_v17 = vmul.f32 %v433_v9, %v431_v11  ;;  %v438_v18 = vsub.f32 0.0, %v437_v12  ;;  %v544_v9 = vmin.f32 %v507_v55, %v525_v57  ;;  %p1145_p2 = pnand %p1144_p1, %p1140_p3 }
  0x79   : > { %v435_v19 = vmul.f32 %v865_v15, %v434_v17  ;;  %v440_v20 = vmul.f32 %v439_v13, %v438_v18 }
  0x7b   : > { %v441_v21 = vmul.f32 %v440_v20, %v428_v16  ;;  %444 = vst [vmem:[#allocation1] ss:$2 sm:$0xff] %v435_v19 }
  0x7d   : > { %v442_v23 = vmul.f32 %v866_v22, %v441_v21 }
  0x82   : > { %v445_v24 = vld.sshfl [vmem:[#allocation1] sm:$0xff pattern:$0x75316420]  ;;  %v446_v25 = vld.sshfl [vmem:[#allocation1 + $0x8] sm:$0xff pattern:$0x75316420] }
  0x83   : > { %v450_v26 = vsel %vm449_vm2, %v445_v24, 0.0  ;;  %v451_v27 = vsel %vm449_vm2, %v446_v25, 0.0  ;;  %463 = vst [vmem:[#allocation1] ss:$2 sm:$0xff] %v442_v23 }
  0x84   : > { %v452_v28 = vadd.f32 %v451_v27, %v450_v26 }
  0x86   : > { %453 = vadd.xlane.f32.xlu0 %v452_v28 }
  0x8a   : > { %v464_v35 = vld.sshfl [vmem:[#allocation1] sm:$0xff pattern:$0x75316420]  ;;  %v465_v36 = vld.sshfl [vmem:[#allocation1 + $0x8] sm:$0xff pattern:$0x75316420] }
  0x8b   : > { %v468_v37 = vsel %vm449_vm2, %v464_v35, 0.0  ;;  %v469_v38 = vsel %vm449_vm2, %v465_v36, 0.0  ;;  %481 = vst [vmem:[#allocation1] ss:$2 sm:$0xff] %v865_v15  ;;  %v601_v35 = vunpack.c.l.s4 %v1199_v34 }
  0x8c   : > { %v470_v39 = vadd.f32 %v469_v38, %v468_v37 }
  0x8d   : > { %v602_v38 = vunpack.c.0.s8 %v601_v35 }
  0x8e   : > { %471 = vadd.xlane.f32.xlu0 %v470_v39 }
  0x92   : > { %v482_v41 = vld.sshfl [vmem:[#allocation1] sm:$0xff pattern:$0x75316420]  ;;  %v483_v42 = vld.sshfl [vmem:[#allocation1 + $0x8] sm:$0xff pattern:$0x75316420] }
  0x93   : > { %v486_v43 = vsel %vm449_vm2, %v482_v41, 0.0  ;;  %v487_v44 = vsel %vm449_vm2, %v483_v42, 0.0  ;;  %508 = vst.sshfl [vmem:[#allocation1] sm:$0xff pattern:$0x75643120] %v499_v40  ;;  %v603_v42 = vperm.slane %v1434_v29, %v602_v38 }
  0x94   : > { %v488_v45 = vadd.f32 %v487_v44, %v486_v43 }
  0x96   : > { %489 = vadd.xlane.f32.xlu1 %v488_v45 }
  0x9a   : > { %v510_v46 = vld [vmem:[#allocation1 + $0x1] ss:$2 sm:$0xff] }
  0x9b   : > { %513 = vst.sshfl [vmem:[#allocation1] sm:$0xff pattern:$0x75643120] %v499_v40  ;;  %v512_v60 = vadd.f32 %v510_v46, %v498_v51 }
  0x9d   : > { %v561_v10 = vsub.f32 %v512_v60, %v507_v55 }
  0x9f   : > { %v562_v17 = vadd.f32 1.0, %v561_v10 }
  0xa2   : > { %v515_v48 = vld [vmem:[#allocation1 + $0x1] ss:$2 sm:$0xff] }
  0xa3   : > { %519 = vst.sshfl [vmem:[#allocation1] sm:$0xff pattern:$0x75643120] %v500_v47  ;;  %v517_v56 = vadd.f32 %v515_v48, %v498_v51 }
  0xa5   : > { %v563_v4 = vsub.f32 %v517_v56, %v507_v55 }
  0xa7   : > { %v564_v11 = vadd.f32 1.0, %v563_v4 }
  0xa9   : > { %v868_v18 = vrot.slane %v564_v11, 9 }
  0xaa   : > { %v521_v50 = vld [vmem:[#allocation1 + $0x1] ss:$2 sm:$0xff] }
  0xab   : > { %531 = vst.sshfl [vmem:[#allocation1] sm:$0xff pattern:$0x75643120] %v500_v47  ;;  %v523_v0 = vmin.f32 %v512_v60, %v521_v50  ;;  %v569_v24 = vmul.f32 %v868_v18, %v562_v17 }
  0xad   : > { %v528_v5 = vsub.f32 %v523_v0, %v527_v61 }
  0xaf   : > { %v529_v12 = vadd.f32 1.0, %v528_v5 }
  0xb1   : > { %v530_v19 = vmax.f32 %v529_v12, 0.0 }
  0xb2   : > { %v533_v58 = vld [vmem:[#allocation1 + $0x1] ss:$2 sm:$0xff] }
  0xb3   : > { %539 = vst.sshfl [vmem:[#allocation1] sm:$0xff pattern:$0x75643120] %v500_v47  ;;  %v535_v62 = vmin.f32 %v517_v56, %v533_v58 }
  0xb5   : > { %v536_v1 = vsub.f32 %v535_v62, %v527_v61 }
  0xb7   : > { %v537_v6 = vadd.f32 1.0, %v536_v1 }
  0xb9   : > { %v538_v13 = vmax.f32 %v537_v6, 0.0 }
  0xba   : > { %v541_v2 = vld [vmem:[#allocation1 + $0x1] ss:$2 sm:$0xff] }
  0xbb   : > { %548 = vst.sshfl [vmem:[#allocation1] sm:$0xff pattern:$0x75643120] %v500_v47  ;;  %v543_v7 = vmax.f32 %v512_v60, %v541_v2  ;;  %v867_v22 = vrot.slane %v538_v13, 9 }
  0xbd   : > { %v545_v14 = vsub.f32 %v543_v7, %v544_v9  ;;  %v560_v27 = vmul.f32 %v867_v22, %v530_v19 }
  0xbf   : > { %v546_v20 = vadd.f32 1.0, %v545_v14 }
  0xc1   : > { %v547_v25 = vmax.f32 %v546_v20, 0.0 }
  0xc2   : > { %v550_v15 = vld [vmem:[#allocation1 + $0x1] ss:$2 sm:$0xff] }
  0xc3   : > { %v552_v16 = vmax.f32 %v517_v56, %v550_v15  ;;  %580 = vst.sshfl [vmem:[#allocation1] sm:$0xff pattern:$0x75643120] %v578_v8 }
  0xc5   : > { %v553_v21 = vsub.f32 %v552_v16, %v544_v9 }
  0xc7   : > { %v554_v23 = vadd.f32 1.0, %v553_v21 }
  0xc9   : > { %v555_v26 = vmax.f32 %v554_v23, 0.0 }
  0xca   : > { %v582_v28 = vld [vmem:[#allocation1 + $0x1] ss:$2 sm:$0xff] }
  0xcb   : > { %v584_v30 = vadd.f32 %v582_v28, %v569_v24  ;;  %v870_v31 = vrot.slane %v555_v26, 9  ;;  %v650_v28 = vlaneseq }
  0xcd   : > { %v585_v32 = vsub.f32 %v584_v30, %v560_v27  ;;  %v590_v33 = vmul.f32 %v870_v31, %v547_v25  ;;  %v651_v30 = vshrl.u32 %v650_v28, 7 }
  0xcf   : > { %967 = vrcp.f32 %v585_v32  ;;  %v593_v36 = vsub.f32 %v590_v33, %v585_v32  ;;  %vm652_vm7 = vcmp.eq.s32.totalorder %v651_v30, 0  ;;  %vm655_vm8 = vcmp.eq.s32.totalorder %v651_v30, 1 }
  0xd0   : > { %969 = vrcp.f32 %v590_v33  ;;  %vm658_vm9 = vcmp.eq.s32.totalorder %v651_v30, 2  ;;  %vm661_vm10 = vcmp.eq.s32.totalorder %v651_v30, 3  ;;  %vm664_vm11 = vcmp.eq.s32.totalorder %v651_v30, 4 }
  0xd5   : > { %v968_v37 = vpop.eup %967 }
  0xd6   : > { %v970_v39 = vpop.eup %969  ;;  %v592_v40 = vmul.f32 %v968_v37, %v560_v27 }
  0xd7   : > { %v595_v41 = vmul.f32 %v970_v39, %v593_v36 }
  0xd9   : > { %v596_v43 = vsub.f32 %v592_v40, %v595_v41 }
  0xdb   : > { %v597_v44 = vsub.f32 1.0, %v596_v43 }
  0xdd   : > { %v605_v45 = vmul.f32 %v603_v42, %v597_v44 }
  0xdf   : > { %v607_v46 = vrot.slane %v605_v45, 1  ;;  %v608_v47 = vrot.slane %v605_v45, 2  ;;  %v609_v48 = vrot.slane %v605_v45, 3 }
  0xe1   : > { %v611_v49 = vsel %vm610_vm3, %v605_v45, %v607_v46  ;;  %v613_v50 = vsel %vm612_vm5, %v608_v47, %v609_v48 }
  0xe2   : > { %v614_v51 = vsel %vm504_vm4, %v611_v49, %v613_v50 }
  0xe3   : > { %v616_v52 = vsel %vm598_vm6, %v614_v51, 0.0 }
  0xe4   : > { %v618_v53 = vperm.slane %v616_v52, 0  ;;  %v619_v54 = vperm.slane %v616_v52, 1 }
  0xe6   : > { %v622_v55 = vsel %vm610_vm3, %v618_v53, 0.0  ;;  %v623_v56 = vsel %vm610_vm3, %v619_v54, 0.0  ;;  %v642_v14 = vpop.xlane.xlu2 %641 }
  0xe7   : > { %v624_v57 = vadd.f32 %v623_v56, %v622_v55  ;;  %v643_v15 = vrot.slane %v642_v14, 4 }
  0xe9   : > { %625 = vadd.xlane.f32.xlu1 %v624_v57  ;;  %v644_v16 = vadd.f32 %v643_v15, %v642_v14 }
  0xeb   : > { %v645_v17 = vrot.slane %v644_v16, 2 }
  0xed   : > { %v646_v21 = vadd.f32 %v645_v17, %v644_v16 }
  0xef   : > { %v647_v24 = vrot.slane %v646_v21, 1 }
  0xf1   : > { %v648_v27 = vadd.f32 %v647_v24, %v646_v21 }
  0xf9   : > { %v454_v58 = vpop.xlane.xlu0 %453 }
  0xfa   : > { %v455_v59 = vrot.slane %v454_v58, 4 }
  0xfc   : > { %v456_v60 = vadd.f32 %v455_v59, %v454_v58 }
  0xfe   : > { %v457_v61 = vrot.slane %v456_v60, 2 }
 0x100   : > { %v458_v62 = vadd.f32 %v457_v61, %v456_v60 }
 0x101   : > { %v472_v29 = vpop.xlane.xlu0 %471 }
 0x102   : > { %v473_v63 = vrot.slane %v472_v29, 4  ;;  %v459_v0 = vrot.slane %v458_v62, 1 }
 0x104   : > { %v474_v1 = vadd.f32 %v473_v63, %v472_v29  ;;  %v460_v2 = vadd.f32 %v459_v0, %v458_v62 }
 0x106   : > { %v475_v3 = vrot.slane %v474_v1, 2  ;;  %879 = vpush %v460_v2 }
 0x108   : > { %v476_v4 = vadd.f32 %v475_v3, %v474_v1 }
 0x109   : > { %v490_v5 = vpop.xlane.xlu1 %489 }
 0x10a   : > { %v491_v6 = vrot.slane %v490_v5, 4  ;;  %v477_v7 = vrot.slane %v476_v4, 1 }
 0x10c   : > { %v492_v8 = vadd.f32 %v491_v6, %v490_v5  ;;  %v478_v9 = vadd.f32 %v477_v7, %v476_v4 }
 0x10e   : > { %v493_v10 = vrot.slane %v492_v8, 2  ;;  %881 = vpush %v478_v9 }
 0x110   : > { %v494_v11 = vadd.f32 %v493_v10, %v492_v8 }
 0x112   : > { %v495_v12 = vrot.slane %v494_v11, 1 }
 0x114   : > { %v496_v13 = vadd.f32 %v495_v12, %v494_v11 }
 0x116   : > { %883 = vpush %v496_v13 }
 0x137   : > { %s880_s3 = spop %879 }
 0x138   : > { %v653_v31 = vstv %s880_s3 }
 0x139   : > { %v654_v32 = vsel %vm652_vm7, %v653_v31, 0.0 }
 0x13f   : > { %s882_s23 = spop %881 }
 0x140   : > { %v656_v33 = vstv %s882_s23 }
 0x141   : > { %v657_v34 = vsel %vm655_vm8, %v656_v33, %v654_v32 }
 0x147   : > { %s884_s0 = spop %883 }
 0x148   : > { %v659_v35 = vstv %s884_s0 }
 0x149   : > { %v660_v36 = vsel %vm658_vm9, %v659_v35, %v657_v34 }
 0x15c   : > { %v626_v18 = vpop.xlane.xlu1 %625 }
 0x15d   : > { %v627_v19 = vrot.slane %v626_v18, 4 }
 0x15f   : > { %v628_v20 = vadd.f32 %v627_v19, %v626_v18 }
 0x161   : > { %v629_v22 = vrot.slane %v628_v20, 2 }
 0x163   : > { %v630_v23 = vadd.f32 %v629_v22, %v628_v20 }
 0x165   : > { %v631_v25 = vrot.slane %v630_v23, 1 }
 0x167   : > { %v632_v26 = vadd.f32 %v631_v25, %v630_v23 }
 0x169   : > { %885 = vpush %v632_v26 }
 0x16a   : > { %887 = vpush %v648_v27 }
 0x19a   : > { %s886_s27 = spop %885 }
 0x19b   : > { %v662_v37 = vstv %s886_s27  ;;  %s888_s29 = spop %887 }
 0x19c   : > { %v663_v38 = vsel %vm661_vm10, %v662_v37, %v660_v36  ;;  %v665_v39 = vstv %s888_s29 }
 0x19d   : > { %v666_v40 = vsel %vm664_vm11, %v665_v39, %v663_v38 }
 0x19e   : > { %667 = vst [vmem:[%s411_s15] sm:$0xff] %v666_v40 }
 0x19f   : > { %1148 = shalt.err (!%p1145_p2)
}
 0x1a0   : > { %901 = dma.vmem_to_hbm [thread:$0]  (%p1350_p7), %s682_s18, 128, %s684_s30, %s669_s10  }
 0x1a1 PF: > { %s695_s8 = sand.u32 1, %s1183_s21   ;;  %p1514_p4 = scmp.ge.s32.totalorder %s1195_s24, 2 }
 0x1a2   : > { %s696_s3 = scalar_lea.sflag [#allocation4], %s695_s8 }
 0x1a3   : > { %p921_p10 = pnand %p1514_p4, %p1354_p9 }
 0x1a5   : > { %p922_p8 = pneg %p921_p10 }
 0x1a7   : > { %1178 = dma.done.wait (%p922_p8), %s696_s3, 128  }
 0x1a8   : > { %1180 = vsyncadd (%p922_p8), %s696_s3, 4294967168  ;;  %s1515_s23 = sld [smem:[#allocation16_spill]]  ;;  %p23_p0 = scmp.ge.s32.totalorder %s1256_s25, 4  }
 0x1a9   : > { %s1516_s12 = sld [smem:[#allocation17_spill]]  ;;  %s1517_s21 = smov %s1187_s22 }
 0x1aa   : > { %s1520_s24 = smov %s1256_s25 }
 0x1ab   :  { %25 = sbr.rel (!%p23_p0) target bundleno = 12 (0xc), region = 139 }
 0x1ae   : > { %s1518_s22 = smov %s1515_s23 }
 0x1af   : > { %s1519_s23 = smov %s1516_s12 }
 0x1b0   :  { %702 = vsyncpa [#allocation3], 1 }
 0x1b1   :  { %704 = vsyncpa [#allocation3 + $0x1], 1 }
 0x1b2   :  { %705 = vsyncpa [#allocation6], 1 }
 0x1b3   :  { %707 = vsyncpa [#allocation6 + $0x1], 1 }
 0x1b4   :  { %708 = vsyncpa [#allocation9], 1 }
 0x1b5   :  { %710 = vsyncpa [#allocation9 + $0x1], 1 }
 0x1b6   :  { %711 = vsyncpa [#allocation4], 1 }
 0x1b7   :  { %713 = vsyncpa [#allocation4 + $0x1], 1 }

</bundles_post_ra>
